<compile_context>
chip_gen: v7x
topology: tpu7x:2x2x1
jax: 0.10.0
libtpu: 0.0.40
codegen_flags: <defaults>
</compile_context>

<pallas_src>
import math

import jax
import jax.numpy as jnp
from jax.experimental import pallas as pl
from jax.experimental.pallas import tpu as pltpu

PAD_ID = -1  # ignored index (masked to zero), matching `ignored_index=PAD_ID`

_LANE = 128
_SUBLANE = 8
_TARGET_OUT_BLOCK_BYTES = 2 * 1024 * 1024   # per output buffer (x2 when double-buffered)
_MIN_ROWS_FOR_SPLIT = 256                   # force >=2 grid steps above this (v7x megacore)


def _cdiv(a: int, b: int) -> int:
    return -(-a // b)


def _round_up(x: int, m: int) -> int:
    return _cdiv(x, m) * m


def _make_kernel(ignored_value: float):
    def kernel(idx_ref, sel_ref, tbl_ref, out_ref):
        # idx_ref : (tr, k)  int32   positional indices, k tokens per output row
        # sel_ref : (k, W)   float32 one-hot lane-group selector (sel[g, l] = [l // E == g])
        # tbl_ref : (3, W)   float32 row0 div_term, row1 cos-mult, row2 sin-mult
        #                            (each tiled k times across the W = k*E lanes)
        # out_ref : (tr, W)  out_dtype
        #
        # Broadcast the k token indices across their E-wide lane groups with a tiny
        # one-hot MXU matmul (exact for one-hot f32 operands); everything else is
        # VPU/EUP work hidden under the output write DMA.
        t = jnp.dot(idx_ref[...].astype(jnp.float32), sel_ref[...],
                    preferred_element_type=jnp.float32)                 # (tr, W)
        tbl = tbl_ref[...]
        phase = t * tbl[0:1, :]
        # Exact two-transcendental form of the reference (no sin(x+pi/2) rewrite).
        result = jnp.cos(phase) * tbl[1:2, :] + jnp.sin(phase) * tbl[2:3, :]
        # Mask on the already-broadcast f32 t (exact for small integer pad ids).
        out_ref[...] = jnp.where(t == ignored_value, 0.0, result).astype(out_ref.dtype)

    return kernel


def make_posenc_tables(embedding_dim: int, width: int, k: int):
    """Constant tables: (k, width) one-hot lane-group selector and (3, width) coeff table."""
    e = embedding_dim
    div_term = jnp.arange(0, e, dtype=jnp.int32) // 2 * 2
    div_term = jnp.exp(div_term.astype(jnp.float32) * (-math.log(10000.0) / e))
    dims = jnp.arange(e, dtype=jnp.int32)
    cos_mult = (dims % 2 == 1).astype(jnp.float32)   # multiplier[0, 1::2] = 1
    sin_mult = (dims % 2 == 0).astype(jnp.float32)   # multiplier[1, 0::2] = 1
    tbl = jnp.stack([div_term, cos_mult, sin_mult], axis=0)   # (3, e)
    tbl = jnp.tile(tbl, (1, k))                                # (3, k*e)
    if tbl.shape[1] < width:
        tbl = jnp.pad(tbl, ((0, 0), (0, width - tbl.shape[1])))
    lane = jnp.arange(width, dtype=jnp.int32)
    group = jnp.where(lane < k * e, lane // e, -1)
    sel = (group[None, :] == jnp.arange(k, dtype=jnp.int32)[:, None]).astype(jnp.float32)
    return sel, tbl


def positional_encoding(index_or_range, embedding_dim: int,
                        ignored_index: int = PAD_ID,
                        out_dtype=jnp.float32):
    """
    Pallas-backed equivalent of PositionalEncoding.forward.

    - int / range input  -> output [T, E]
    - array input [*, L] -> output [*, L, E]
    """
    if isinstance(index_or_range, int):
        indices = jnp.arange(0, index_or_range, dtype=jnp.int32)
    elif isinstance(index_or_range, range):
        indices = jnp.asarray(list(index_or_range), dtype=jnp.int32)
    else:
        indices = jnp.asarray(index_or_range, dtype=jnp.int32)

    orig_shape = indices.shape
    n = int(indices.size)
    e = int(embedding_dim)
    if n == 0:
        return jnp.zeros((*orig_shape, e), dtype=out_dtype)

    # Output layout: pack k tokens per 128-lane row whenever possible so the
    # [R, W] slab is exactly the row-major memory of [N, E] (lane-dense stores,
    # zero padded HBM bytes).  Fallback: lane-pad E to a multiple of 128.
    if e % _LANE == 0:
        width, k = e, 1
    elif _LANE % e == 0:
        width, k = _LANE, _LANE // e
    else:
        width, k = _round_up(e, _LANE), 1

    r = _cdiv(n, k)                              # packed output rows (exact, no tile padding)

    # Row tile from a byte budget; split big single-step grids for v7x dual-TC.
    out_itemsize = jnp.dtype(out_dtype).itemsize
    tr_budget = max(_SUBLANE,
                    (_TARGET_OUT_BLOCK_BYTES // (width * out_itemsize)) // _SUBLANE * _SUBLANE)
    steps = _cdiv(r, tr_budget)
    if steps == 1 and r >= _MIN_ROWS_FOR_SPLIT:
        steps = 2
    if steps == 1:
        tr = r                                   # block == full row extent (legal for any r)
    else:
        tr = _round_up(_cdiv(r, steps), _SUBLANE)
    grid = (_cdiv(r, tr),)

    # Flattened indices, padded only inside the last packed row with ignored_index
    # (those slots become zeros and are sliced off when N % k != 0).
    idx_flat = indices.reshape(-1)
    if r * k != n:
        idx_flat = jnp.pad(idx_flat, (0, r * k - n), constant_values=ignored_index)
    idx = idx_flat.reshape(r, k)

    sel, tbl = make_posenc_tables(e, width, k)

    # VMEM footprint: double-buffered out + idx blocks, resident constants, f32 temps.
    vmem_needed = (2 * tr * width * out_itemsize        # output blocks
                   + 2 * tr * _LANE * 4                 # idx blocks (lane-padded int32)
                   + 2 * 2 * _SUBLANE * width * 4       # sel + tbl (sublane-padded)
                   + 4 * tr * width * 4)                # elementwise f32 temporaries
    vmem_limit = int(min(64 * 1024 * 1024, vmem_needed + (2 << 20)))

    cost = pl.CostEstimate(
        flops=int(r * width * (2 * k + 4)),             # one-hot matmul + scale/mult-add/select
        transcendentals=int(2 * r * width),             # cos + sin
        bytes_accessed=int(r * width * out_itemsize + r * k * 4 + (3 + k) * width * 4),
    )

    out = pl.pallas_call(
        _make_kernel(float(ignored_index)),
        out_shape=jax.ShapeDtypeStruct((r, width), out_dtype),
        grid=grid,
        in_specs=[
            pl.BlockSpec((tr, k), lambda i: (i, 0)),        # packed index tile
            pl.BlockSpec((k, width), lambda i: (0, 0)),     # lane-group selector (resident)
            pl.BlockSpec((3, width), lambda i: (0, 0)),     # div/cos/sin table (resident)
        ],
        out_specs=pl.BlockSpec((tr, width), lambda i: (i, 0)),
        compiler_params=pltpu.CompilerParams(
            dimension_semantics=("parallel",),              # shards grid across TCs on v7x
            vmem_limit_bytes=vmem_limit,
        ),
        cost_estimate=cost,
    )(idx, sel, tbl)

    if width == k * e:
        flat = out.reshape(r * k, e)          # free: identical row-major memory
        if r * k != n:
            flat = flat[:n]                   # only when N % k != 0 (at most k-1 rows)
    else:
        flat = out[:n, :e]                    # fallback path only (E not a divisor/multiple of 128)
    return flat.reshape(*orig_shape, e)


def _reference(indices, embedding_dim, ignored_index=PAD_ID):
    """Pure-JAX reference mirroring the original PyTorch math exactly."""
    e = embedding_dim
    div_term = jnp.arange(0, e, dtype=jnp.int32) // 2 * 2
    div_term = jnp.exp(div_term.astype(jnp.float32) * (-math.log(10000.0) / e))
    dims = jnp.arange(e, dtype=jnp.int32)
    cos_mult = (dims % 2 == 1).astype(jnp.float32)
    sin_mult = (dims % 2 == 0).astype(jnp.float32)
    idx = jnp.asarray(indices, dtype=jnp.int32)[..., None]
    phase = idx.astype(jnp.float32) * div_term
    res = jnp.cos(phase) * cos_mult + jnp.sin(phase) * sin_mult
    return jnp.where(idx == ignored_index, 0.0, res)


if __name__ == "__main__":
    key = jax.random.PRNGKey(0)
    B, L, E = 2, 8, 32

    # Random indices in [0, 100), with a few PAD_ID entries to exercise masking.
    idx = jax.random.randint(key, (B, L), 0, 100, dtype=jnp.int32)
    idx = idx.at[0, 3].set(PAD_ID)
    idx = idx.at[1, 7].set(PAD_ID)

    # Tensor path: [B, L] -> [B, L, E]  (packed layout, k = 4 tokens per 128-lane row).
    out_tensor = jax.block_until_ready(positional_encoding(idx, E))
    ref_tensor = _reference(idx, E)
    assert out_tensor.shape == (B, L, E)
    assert jnp.allclose(out_tensor, ref_tensor, atol=1e-4, rtol=1e-4)

    # Integer path with T not a multiple of k (exercises the packed-tail slice).
    T = 13
    out_int = jax.block_until_ready(positional_encoding(T, E))
    ref_int = _reference(jnp.arange(T, dtype=jnp.int32), E)
    assert out_int.shape == (T, E)
    assert jnp.allclose(out_int, ref_int, atol=1e-4, rtol=1e-4)

    # Larger 1-D case: multi-step grid with a ragged last block (grid=2, 256+244 rows).
    k2 = jax.random.PRNGKey(1)
    idx_long = jax.random.randint(k2, (2000,), 0, 5000, dtype=jnp.int32)
    idx_long = idx_long.at[17].set(PAD_ID)
    out_long = jax.block_until_ready(positional_encoding(idx_long, E))
    ref_long = _reference(idx_long, E)
    assert out_long.shape == (2000, E)
    # Phases reach ~5e3 here; f32 argument-reduction differences between sin/cos
    # implementations can be ~|x| * 2^-24 ~ 3e-4, so allow that much slack.
    assert jnp.allclose(out_long, ref_long, atol=1e-3, rtol=1e-3)

    # Fallback path: E = 48 (neither a divisor nor a multiple of 128).
    E2 = 48
    idx2 = jax.random.randint(jax.random.PRNGKey(2), (2, 6), 0, 50, dtype=jnp.int32)
    idx2 = idx2.at[1, 0].set(PAD_ID)
    out_fb = jax.block_until_ready(positional_encoding(idx2, E2))
    ref_fb = _reference(idx2, E2)
    assert out_fb.shape == (2, 6, E2)
    assert jnp.allclose(out_fb, ref_fb, atol=1e-4, rtol=1e-4)

    print("KERNEL_OK")
</pallas_src>

<mosaic_0001>
module attributes {stable_mosaic.version = 11 : i64} {
  func.func @kernel(%arg0: i32, %arg1: memref<4x4xi32, #tpu.memory_space<vmem>>, %arg2: memref<4x128xf32, #tpu.memory_space<vmem>>, %arg3: memref<3x128xf32, #tpu.memory_space<vmem>>, %arg4: memref<4x128xf32, #tpu.memory_space<vmem>>) attributes {dimension_semantics = [#tpu.dimension_semantics<parallel>], iteration_bounds = array<i64: 1>, scalar_prefetch = 0 : i64, scratch_operands = 0 : i64, tpu.core_type = #tpu.core_type<tc>, window_params = [{transform_indices = @transform_0, window_bounds = array<i64: 4, 4>}, {pipeline_mode = #tpu.pipeline_mode<synchronous>, transform_indices = @transform_1, window_bounds = array<i64: 4, 128>}, {pipeline_mode = #tpu.pipeline_mode<synchronous>, transform_indices = @transform_2, window_bounds = array<i64: 3, 128>}, {transform_indices = @transform_3, window_bounds = array<i64: 4, 128>}]} {
    %c0 = arith.constant 0 : index
    %c0_0 = arith.constant 0 : index
    %0 = vector.load %arg1[%c0, %c0_0] : memref<4x4xi32, #tpu.memory_space<vmem>>, vector<4x4xi32>
    %1 = arith.sitofp %0 : vector<4x4xi32> to vector<4x4xf32>
    %c0_1 = arith.constant 0 : index
    %c0_2 = arith.constant 0 : index
    %2 = vector.load %arg2[%c0_1, %c0_2] : memref<4x128xf32, #tpu.memory_space<vmem>>, vector<4x128xf32>
    %cst = arith.constant dense<0.000000e+00> : vector<4x128xf32>
    %3 = tpu.matmul %1, %2, %cst {dimension_numbers = #tpu.dot_dimension_numbers<[1], [0], [0], [1], [0, 0, 1, 1], [], []>} : vector<4x4xf32>, vector<4x128xf32>, vector<4x128xf32> -> vector<4x128xf32>
    %c0_3 = arith.constant 0 : index
    %c0_4 = arith.constant 0 : index
    %4 = vector.load %arg3[%c0_3, %c0_4] : memref<3x128xf32, #tpu.memory_space<vmem>>, vector<3x128xf32>
    %5 = vector.extract_strided_slice %4 {offsets = [0, 0], sizes = [1, 128], strides = [1, 1]} : vector<3x128xf32> to vector<1x128xf32>
    %6 = vector.broadcast %5 : vector<1x128xf32> to vector<4x128xf32>
    %7 = arith.mulf %3, %6 : vector<4x128xf32>
    %8 = math.cos %7 : vector<4x128xf32>
    %9 = vector.extract_strided_slice %4 {offsets = [1, 0], sizes = [1, 128], strides = [1, 1]} : vector<3x128xf32> to vector<1x128xf32>
    %10 = vector.broadcast %9 : vector<1x128xf32> to vector<4x128xf32>
    %11 = arith.mulf %8, %10 : vector<4x128xf32>
    %12 = math.sin %7 : vector<4x128xf32>
    %13 = vector.extract_strided_slice %4 {offsets = [2, 0], sizes = [1, 128], strides = [1, 1]} : vector<3x128xf32> to vector<1x128xf32>
    %14 = vector.broadcast %13 : vector<1x128xf32> to vector<4x128xf32>
    %15 = arith.mulf %12, %14 : vector<4x128xf32>
    %16 = arith.addf %11, %15 : vector<4x128xf32>
    %cst_5 = arith.constant -1.000000e+00 : f32
    %17 = vector.broadcast %cst_5 : f32 to vector<4x128xf32>
    %18 = arith.cmpf oeq, %3, %17 : vector<4x128xf32>
    %cst_6 = arith.constant 0.000000e+00 : f32
    %19 = vector.broadcast %cst_6 : f32 to vector<4x128xf32>
    %20 = arith.select %18, %19, %16 : vector<4x128xi1>, vector<4x128xf32>
    %c0_7 = arith.constant 0 : index
    %c0_8 = arith.constant 0 : index
    %21 = vector.load %arg4[%c0_7, %c0_8] : memref<4x128xf32, #tpu.memory_space<vmem>>, vector<4x128xf32>
    tpu.vector_store %arg4[%c0_7, %c0_8], %20 {strides = array<i32>} : memref<4x128xf32, #tpu.memory_space<vmem>>, vector<4x128xf32>,
    return
  }
  func.func @transform_0(%arg0: i32) -> (i32, i32) {
    %c0_i32 = arith.constant 0 : i32
    %c0_i32_0 = arith.constant 0 : i32
    return %arg0, %c0_i32 : i32, i32
  }
  func.func @transform_1(%arg0: i32) -> (i32, i32) {
    %c0_i32 = arith.constant 0 : i32
    %c0_i32_0 = arith.constant 0 : i32
    %c0_i32_1 = arith.constant 0 : i32
    return %c0_i32, %c0_i32_0 : i32, i32
  }
  func.func @transform_2(%arg0: i32) -> (i32, i32) {
    %c0_i32 = arith.constant 0 : i32
    %c0_i32_0 = arith.constant 0 : i32
    %c0_i32_1 = arith.constant 0 : i32
    return %c0_i32, %c0_i32_0 : i32, i32
  }
  func.func @transform_3(%arg0: i32) -> (i32, i32) {
    %c0_i32 = arith.constant 0 : i32
    %c0_i32_0 = arith.constant 0 : i32
    return %arg0, %c0_i32 : i32, i32
  }
}

</mosaic_0001>

<bundles_post_ra>
// kernel: tpu_custom_call.1
= control target key start
LH: loop header
LB: loop body
LE: loop exit
PB: predicated region body
PF: predicated region fallthrough
CT: control target
= control target key end

     0   :  { %8 = vsyncpa [#allocation3], 0  ;;  %s576_s0 = inlined_call_operand.hbm [shape: s32[4,4], index: 0, kind: input, shape index: {}]   ;;  %s577_s1 = inlined_call_operand.hbm [shape: f32[4,128], index: 1, kind: input, shape index: {}]   ;;  %s578_s2 = inlined_call_operand.vmem [shape: f32[3,128], index: 2, kind: input, shape index: {}]   ;;  %s579_s3 = inlined_call_operand.hbm [shape: f32[4,128], index: 3, kind: output, shape index: {}]  }
   0x1   :  { %9 = vsyncpa [#allocation6], 0 }
   0x2   :  { %10 = vsyncpa [#allocation4], 0  ;;  %s471_s12 = smov [#allocation2]   ;;  %s472_s14 = smov [#allocation5]  }
   0x3   :  { %s17_s13 = sshll.u32 %s471_s12, 4  ;;  %s27_s15 = sshll.u32 %s472_s14, 4  ;;  %s18_s13 = int_to_ptr.vmem [resolvable:$true] %s17_s13  ;;  %s28_s15 = int_to_ptr.vmem [resolvable:$true] %s27_s15 }
   0x4   :  { %s399_s18 = scalar_lea.hbm %s576_s0, 64 }
   0x5   :  { %p400_p0 = scmp.ne.s32.totalorder %s576_s0, %s399_s18  ;;  %p403_p1 = scmp.lt.u32.totalorder %s399_s18, %s576_s0 }
   0x7   :  { %p405_p2 = pnand %p403_p1, %p400_p0 }
   0x9   :  { %408 = shalt.err (!%p405_p2)
}
   0xa   :  { %s409_s23 = scalar_lea.vmem %s18_s13, 64  ;;  %p414_p4 = scmp.lt.s32.totalorder %s18_s13, %s18_s13 }
   0xb   :  { %p410_p3 = scmp.ne.s32.totalorder %s18_s13, %s409_s23  ;;  %p415_p5 = scmp.lt.s32.totalorder %s409_s23, %s409_s23 }
   0xd   :  { %p416_p6 = por %p415_p5, %p414_p4 }
   0xf   :  { %p417_p7 = pnand %p416_p6, %p410_p3 }
  0x11   :  { %420 = shalt.err (!%p417_p7)
}
  0x12   :  { %20 = dma.hbm_to_vmem [thread:$0]  %s576_s0, 64, %s18_s13, [#allocation3]  }
  0x13   :  { %s421_s28 = scalar_lea.hbm %s577_s1, 64 }
  0x14   :  { %p422_p8 = scmp.ne.s32.totalorder %s577_s1, %s421_s28  ;;  %p425_p9 = scmp.lt.u32.totalorder %s421_s28, %s577_s1 }
  0x16   :  { %p427_p10 = pnand %p425_p9, %p422_p8 }
  0x18   :  { %430 = shalt.err (!%p427_p10)
}
  0x19   :  { %s431_s6 = scalar_lea.vmem %s28_s15, 64  ;;  %p436_p12 = scmp.lt.s32.totalorder %s28_s15, %s28_s15 }
  0x1a   :  { %p432_p11 = scmp.ne.s32.totalorder %s28_s15, %s431_s6  ;;  %p437_p13 = scmp.lt.s32.totalorder %s431_s6, %s431_s6 }
  0x1c   :  { %p438_p0 = por %p437_p13, %p436_p12 }
  0x1e   :  { %p439_p1 = pnand %p438_p0, %p432_p11 }
  0x20   :  { %442 = shalt.err (!%p439_p1)
}
  0x21   :  { %30 = dma.hbm_to_vmem [thread:$0]  %s577_s1, 64, %s28_s15, [#allocation6]  }
  0x22   :  { %465 = dma.done.wait [#allocation3], 64  }
  0x23   :  { %466 = vsyncadd [#allocation3], 4294967232 }
  0x24   :  { %467 = dma.done.wait [#allocation6], 64  }
  0x25   :  { %468 = vsyncadd [#allocation6], 4294967232  ;;  %v473_v0 = vmov 0.0   ;;  %vm474_vm0 = vmmov 0   ;;  %vm46_vm1 = vcmask 1043456   ;;  %vm42_vm2 = vcmask 31744  }
  0x26   :  { %375 = vmatprep.subr.mxu0 %v473_v0  ;;  %377 = vmatprep.mubr.msk.f32.mxu0 %vm474_vm0, %v473_v0  ;;  %v41_v1 = vld [vmem:[#allocation5] sm:$0xf]  ;;  %v39_v2 = vld [vmem:[#allocation2] sm:$0xf]  ;;  %v121_v4 = vlaneseq  ;;  %v475_v22 = vmov 683565275  }
  0x27   :  { %376 = vmatpush3.msk.msra.mxu0 %vm46_vm1, %v41_v1  ;;  %v40_v3 = vcvt.s32.f32 %v39_v2  ;;  %v532_v7 = vld [vmem:[%s578_s2] sm:$0x7]  ;;  %v476_v24 = vmov 2475754826   ;;  %v477_v27 = vmov 2131351028  }
  0x28   :  { %v526_v5 = vshrl.u32 %v121_v4, 7  ;;  %v478_v30 = vmov 2102212464   ;;  %v479_v33 = vmov 920167782   ;;  %s481_s2 = smov [#allocation7]  }
  0x29   :  { %378 = vmatmul.mubr.msk.f32.vlgmr.msra.gmra.mrb[0].mxu0 %vm42_vm2, %v40_v3  ;;  %v480_v36 = vmov 1326507024   ;;  %s353_s9 = sshll.u32 %s481_s2, 4  ;;  %s354_s9 = int_to_ptr.vmem [resolvable:$true] %s353_s9 }
  0x2a   :  { %v123_v6 = vsub.s32 0, %v526_v5  ;;  %s443_s10 = scalar_lea.vmem %s354_s9, 64  ;;  %p448_p3 = scmp.lt.s32.totalorder %s354_s9, %s354_s9 }
  0x2b   :  { %p444_p2 = scmp.ne.s32.totalorder %s354_s9, %s443_s10  ;;  %p449_p4 = scmp.lt.s32.totalorder %s443_s10, %s443_s10 }
  0x2c   :  { %v124_v8 = vrot.slane %v532_v7, %v123_v6 }
  0x2d   :  { %p450_p5 = por %p449_p4, %p448_p3 }
  0x2f   :  { %p451_p6 = pnand %p450_p5, %p444_p2 }
  0xfc   :  { %v535_v9 = vpop.f32.mrb[0].mxu0 }
  0xfd   :  { %v538_v10 = vmul.f32 %v124_v8, %v535_v9  ;;  %v379_v11 = vpop.f32.mrb[1].mxu0 }
  0xff   :  { %v129_v12 = vand.u32 2139095040, %v538_v10  ;;  %v126_v16 = vand.u32 2147483647, %v538_v10  ;;  %vm128_vm10 = vcmp.lt.s32.totalorder %v538_v10, 0  ;;  %vm218_vm2 = vweird.f32 %v538_v10 }
 0x101   :  { %v130_v13 = vshrl.u32 %v129_v12, 23  ;;  %v133_v19 = vand.u32 8388607, %v126_v16  ;;  %vm127_vm11 = vcmp.le.f32.partialorder %v126_v16, 0.7853982 }
 0x103   :  { %v365_v14 = vadd.s32 4294967169, %v130_v13  ;;  %v134_v38 = vor.u32 8388608, %v133_v19 }
 0x105   :  { %v136_v15 = vadd.s32 1, %v365_v14  ;;  %v174_v52 = vshll.u32 %v134_v38, 8 }
 0x107   :  { %vm137_vm3 = vcmp.gt.s32.totalorder %v136_v15, 0 }
 0x108   :  { %v138_v17 = vsel %vm137_vm3, %v136_v15, 0  ;;  %vm344_vm3 = vcmp.eq.f32.partialorder %v535_v9, -1.0 }
 0x109   :  { %v140_v18 = vand.u32 31, %v138_v17  ;;  %v139_v21 = vshrl.u32 %v138_v17, 5 }
 0x10b   :  { %v141_v20 = vsub.s32 32, %v140_v18  ;;  %v143_v23 = vshll.u32 %v475_v22, %v140_v18  ;;  %v146_v25 = vshll.u32 %v476_v24, %v140_v18  ;;  %v149_v29 = vshll.u32 %v477_v27, %v140_v18 }
 0x10c   :  { %v152_v32 = vshll.u32 %v478_v30, %v140_v18  ;;  %v155_v35 = vshll.u32 %v479_v33, %v140_v18  ;;  %vm158_vm4 = vcmp.lt.s32.totalorder %v139_v21, 1  ;;  %vm161_vm5 = vcmp.lt.s32.totalorder %v139_v21, 4 }
 0x10d   :  { %v144_v26 = vshrl.u32 %v476_v24, %v141_v20  ;;  %v147_v28 = vshrl.u32 %v477_v27, %v141_v20  ;;  %v150_v31 = vshrl.u32 %v478_v30, %v141_v20  ;;  %v153_v34 = vshrl.u32 %v479_v33, %v141_v20 }
 0x10e   :  { %v156_v37 = vshrl.u32 %v480_v36, %v141_v20  ;;  %v142_v47 = vshrl.u32 %v475_v22, %v141_v20  ;;  %vm160_vm6 = vcmp.lt.s32.totalorder %v139_v21, 3  ;;  %vm159_vm7 = vcmp.lt.s32.totalorder %v139_v21, 2 }
 0x10f   :  { %v145_v39 = vor.u32 %v144_v26, %v143_v23  ;;  %v148_v40 = vor.u32 %v147_v28, %v146_v25  ;;  %v151_v41 = vor.u32 %v150_v31, %v149_v29  ;;  %v154_v42 = vor.u32 %v153_v34, %v152_v32 }
 0x110   :  { %v157_v43 = vor.u32 %v156_v37, %v155_v35  ;;  %v231_v35 = vsub.s32 1, %v526_v5  ;;  %v340_v36 = vsub.s32 2, %v526_v5 }
 0x111   :  { %v163_v44 = vsel %vm161_vm5, %v151_v41, 2102212464  ;;  %v166_v45 = vsel %vm158_vm4, %v145_v39, %v148_v40  ;;  %v170_v46 = vsel %vm158_vm4, %v148_v40, %v151_v41  ;;  %v167_v48 = vsel %vm161_vm5, %v154_v42, 920167782 }
 0x112   :  { %v171_v49 = vsel %vm161_vm5, %v157_v43, 1326507024  ;;  %v168_v50 = vsel %vm160_vm6, %v151_v41, %v167_v48  ;;  %v162_v53 = vsel %vm158_vm4, %v142_v47, %v145_v39  ;;  %v164_v54 = vsel %vm160_vm6, %v148_v40, %v163_v44 }
 0x113   :  { %v172_v51 = vsel %vm160_vm6, %v154_v42, %v171_v49  ;;  %v169_v55 = vsel %vm159_vm7, %v166_v45, %v168_v50  ;;  %v165_v61 = vsel %vm159_vm7, %v162_v53, %v164_v54  ;;  %v232_v41 = vrot.slane %v532_v7, %v231_v35 }
 0x114   :  { %v173_v56 = vsel %vm159_vm7, %v170_v46, %v172_v51  ;;  %v547_v59 = vmul.u32.u64.low %v174_v52, %v169_v55  ;;  %v548_v60 = vmul.u32.u64.high %v174_v52, %v169_v55, %v547_v59  ;;  %v181_v63 = vmul.u32 %v174_v52, %v165_v61 }
 0x115   :  { %v544_v57 = vmul.u32.u64.low %v174_v52, %v173_v56  ;;  %v545_v58 = vmul.u32.u64.high %v174_v52, %v173_v56, %v544_v57  ;;  %v341_v16 = vrot.slane %v532_v7, %v340_v36 }
 0x116   :  { %v184_v62 = vadd.s32 1, %v548_v60 }
 0x117   :  { %vm183_vm8 = vc.u32 %v545_v58, %v547_v59  ;;  %v182_v15 = vadd.s32 %v547_v59, %v545_v58 }
 0x118   :  { %v185_v0 = vsel %vm183_vm8, %v184_v62, %v548_v60 }
 0x119   :  { %v186_v1 = vadd.s32 %v185_v0, %v181_v63 }
 0x11b   :  { %v187_v2 = vadd.s32 536870912, %v186_v1 }
 0x11d   :  { %v188_v3 = vshrl.u32 %v187_v2, 30 }
 0x11f   :  { %v189_v4 = vshll.u32 %v188_v3, 30  ;;  %v212_v28 = vsub.s32 4, %v188_v3 }
 0x121   :  { %v190_v6 = vsub.s32 %v186_v1, %v189_v4  ;;  %v213_v31 = vsel %vm128_vm10, %v212_v28, %v188_v3 }
 0x122   :  { %v215_v33 = vsel %vm127_vm11, 0, %v213_v31 }
 0x123   :  { %v192_v8 = vsub.s32 0, %v190_v6  ;;  %v327_v34 = vadd.s32 3, %v215_v33  ;;  %v219_v37 = vand.u32 3, %v215_v33 }
 0x125   :  { %v366_v11 = vmin.u32 %v192_v8, %v190_v6  ;;  %v328_v38 = vand.u32 3, %v327_v34  ;;  %vm224_vm12 = vcmp.eq.s32.totalorder %v219_v37, 2  ;;  %vm221_vm14 = vcmp.eq.s32.totalorder %v219_v37, 0 }
 0x126   :  { %vm220_vm0 = vcmp.lt.s32.totalorder %v219_v37, 2 }
 0x127   :  { %v194_v12 = vclz %v366_v11  ;;  %vm333_vm13 = vcmp.eq.s32.totalorder %v328_v38, 2  ;;  %vm330_vm15 = vcmp.eq.s32.totalorder %v328_v38, 0  ;;  %vm329_vm1 = vcmp.lt.s32.totalorder %v328_v38, 2 }
 0x129   :  { %v367_v13 = vadd.s32 4294967294, %v194_v12 }
 0x12b   :  { %vm368_vm9 = vcmp.lt.s32.totalorder %v367_v13, 0 }
 0x12c   :  { %v197_v14 = vsel %vm368_vm9, 0, %v367_v13 }
 0x12d   :  { %v198_v17 = vsub.s32 32, %v197_v14  ;;  %v202_v18 = vsub.s32 4294967266, %v197_v14  ;;  %v199_v19 = vshll.u32 %v190_v6, %v197_v14 }
 0x12f   :  { %v200_v20 = vshrl.u32 %v182_v15, %v198_v17  ;;  %v203_v21 = vadd.s32 127, %v202_v18 }
 0x131   :  { %v201_v22 = vor.u32 %v200_v20, %v199_v19  ;;  %v204_v23 = vshll.u32 %v203_v21, 23 }
 0x133   :  { %v205_v24 = vor.u32 4788187, %v204_v23  ;;  %v208_v26 = vcvt.s32.f32 %v201_v22 }
 0x135   :  { %v206_v25 = vand.u32 2147483647, %v205_v24 }
 0x137   :  { %v209_v27 = vmul.f32 %v208_v26, %v206_v25 }
 0x139   :  { %v210_v29 = vxor.u32 2147483648, %v209_v27 }
 0x13b   :  { %v211_v30 = vsel %vm128_vm10, %v210_v29, %v209_v27 }
 0x13c   :  { %v214_v32 = vsel %vm127_vm11, %v538_v10, %v211_v30 }
 0x13d   :  { %395 = vcosq.f32 %v214_v32 }
 0x13e   :  { %397 = vsinq.f32 %v214_v32 }
 0x147   :  { %v396_v39 = vpop.eup %395 }
 0x148   :  { %v398_v40 = vpop.eup %397  ;;  %v225_v42 = vxor.u32 2147483648, %v396_v39 }
 0x149   :  { %v222_v43 = vxor.u32 2147483648, %v398_v40 }
 0x14a   :  { %v226_v44 = vsel %vm224_vm12, %v225_v42, %v398_v40  ;;  %v335_v45 = vsel %vm333_vm13, %v225_v42, %v398_v40 }
 0x14b   :  { %v223_v46 = vsel %vm221_vm14, %v396_v39, %v222_v43  ;;  %v332_v5 = vsel %vm330_vm15, %v396_v39, %v222_v43 }
 0x14c   :  { %v227_v47 = vsel %vm220_vm0, %v223_v46, %v226_v44  ;;  %v336_v48 = vsel %vm329_vm1, %v332_v5, %v335_v45 }
 0x14d   :  { %v228_v49 = vsel %vm218_vm2, nan, %v227_v47  ;;  %v337_v50 = vsel %vm218_vm2, nan, %v336_v48 }
 0x14e   :  { %v233_v51 = vmul.f32 %v232_v41, %v228_v49  ;;  %v342_v52 = vmul.f32 %v341_v16, %v337_v50 }
 0x150   :  { %v343_v7 = vadd.f32 %v342_v52, %v233_v51 }
 0x152   :  { %v345_v53 = vsel %vm344_vm3, 0.0, %v343_v7 }
 0x153   :  { %346 = vst [vmem:[#allocation7] sm:$0xf] %v345_v53 }
 0x154   :  { %454 = shalt.err (!%p451_p6)
}
 0x155   :  { %s455_s13 = scalar_lea.hbm %s579_s3, 64 }
 0x156   :  { %p456_p7 = scmp.ne.s32.totalorder %s579_s3, %s455_s13  ;;  %p459_p8 = scmp.lt.u32.totalorder %s455_s13, %s579_s3 }
 0x158   :  { %p461_p9 = pnand %p459_p8, %p456_p7 }
 0x15a   :  { %464 = shalt.err (!%p461_p9)
}
 0x15b   :  { %356 = dma.vmem_to_hbm [thread:$0]  %s354_s9, 64, %s579_s3, [#allocation4]  }
 0x15c   :  { %469 = dma.done.wait [#allocation4], 64  }
 0x15d   :  { %470 = vsyncadd [#allocation4], 4294967232 }
 0x15e   :  { %360 = vsyncpa [#allocation3], 1 }
 0x15f   :  { %361 = vsyncpa [#allocation6], 1 }
 0x160   :  { %362 = vsyncpa [#allocation4], 1 }

</bundles_post_ra>
